<compile_context>
chip_gen: v5e
topology: v5e:2x2
jax: 0.10.0
libtpu: 0.0.40
codegen_flags: <defaults>
</compile_context>

<pallas_src>
import jax
import jax.numpy as jnp
from jax import lax
from jax.experimental import pallas as pl
from jax.experimental.pallas import tpu as pltpu


def _round_up(v: int, m: int) -> int:
    return ((v + m - 1) // m) * m


def _vmem_capacity_bytes() -> int:
    """Physical VMEM per core; falls back to the v7x value (smallest)."""
    try:
        info = pltpu.get_tpu_info()
        cap = getattr(info, "vmem_capacity_bytes", None)
        if cap:
            return int(cap)
    except Exception:
        pass
    return 64 << 20


def _default_tile_budget_bytes() -> int:
    # Conservative slice of physical VMEM for the (double-buffered) tiles.
    return max(8 << 20, _vmem_capacity_bytes() // 4)


def _vmem_limit_bytes() -> int:
    # Raise the scoped-VMEM limit (16/32 MiB defaults) but stay well under
    # the physical capacity of the current generation.
    return int(min(_vmem_capacity_bytes() // 2, 96 << 20))


def _working_set_bytes(tB: int, tL: int, tK: int, *, ksplit: bool) -> int:
    """Estimated VMEM working set of one grid step (double-buffered DMAs)."""
    return (2 * tB * tK * 4          # x tile, f32, double-buffered
            + 2 * tL * tK * 2        # weight tile, bf16, double-buffered
            + 2 * tL * 4             # bias tile
            + 2 * tB * tL * 4        # output tile (worst case f32)
            + (tB * tL * 4 if ksplit else 0))   # f32 accumulator scratch


# ---------------------------------------------------------------------------
# Kernels
# ---------------------------------------------------------------------------

def _linear_kernel_nosplit(x_ref, w_ref, b_ref, o_ref):
    # x_ref: (tB, D_pad) f32, w_ref: (tL, D_pad) bf16, b_ref: (1, tL) f32.
    # Full K resident: single MXU reduction, bias added once, no scratch.
    acc = lax.dot_general(
        x_ref[...].astype(jnp.bfloat16),          # cast on the fly (VPU)
        w_ref[...],
        dimension_numbers=(((1,), (1,)), ((), ())),  # x @ w.T, no transpose
        preferred_element_type=jnp.float32,
    )
    o_ref[...] = (acc + b_ref[...]).astype(o_ref.dtype)


def _linear_kernel_ksplit(x_ref, w_ref, b_ref, o_ref, acc_ref):
    # Fallback for very large D: K is the innermost ("arbitrary") grid axis.
    k = pl.program_id(2)

    @pl.when(k == 0)
    def _init():
        acc_ref[...] = jnp.zeros_like(acc_ref)

    acc_ref[...] += lax.dot_general(
        x_ref[...].astype(jnp.bfloat16),
        w_ref[...],
        dimension_numbers=(((1,), (1,)), ((), ())),
        preferred_element_type=jnp.float32,
    )

    @pl.when(k == pl.num_programs(2) - 1)
    def _finalize():
        o_ref[...] = (acc_ref[...] + b_ref[...]).astype(o_ref.dtype)


# ---------------------------------------------------------------------------
# Parameter preparation (hoist out of the per-call path)
# ---------------------------------------------------------------------------

def prepare_intent_classifier_params(weight, bias, *, vmem_budget_bytes=None):
    """Pad + cast the constant weight/bias once (model-load time)."""
    L, D = weight.shape
    assert bias.shape == (L,)
    if vmem_budget_bytes is None:
        vmem_budget_bytes = _default_tile_budget_bytes()

    K_p = _round_up(D, 128)
    tL = min(256, _round_up(L, 128))

    # Prefer the collapsed reduction: whole K resident in one block.
    if _working_set_bytes(8, tL, K_p, ksplit=False) <= vmem_budget_bytes:
        tK, ksplit = K_p, False
    else:
        tK = min(2048, K_p)
        while tK > 128 and _working_set_bytes(8, tL, tK, ksplit=True) > vmem_budget_bytes:
            tK //= 2
        ksplit = True

    L_pad = _round_up(L, tL)
    D_pad = _round_up(D, tK)

    w_p = jnp.zeros((L_pad, D_pad), jnp.bfloat16).at[:L, :D].set(
        weight.astype(jnp.bfloat16))
    b_p = jnp.zeros((1, L_pad), jnp.float32).at[0, :L].set(
        bias.astype(jnp.float32))

    return dict(w=w_p, b=b_p, tL=tL, tK=tK, ksplit=ksplit,
                L=L, D=D, L_pad=L_pad, D_pad=D_pad,
                vmem_budget_bytes=vmem_budget_bytes)


# ---------------------------------------------------------------------------
# Forward pass
# ---------------------------------------------------------------------------

def intent_classifier(x, weight, bias, *, params=None, force_pallas=False):
    """Dropout(p=0) + Linear: out = x @ weight.T + bias, in x.dtype."""
    B, D = x.shape
    L, D_w = weight.shape
    assert D == D_w and bias.shape == (L,)
    out_dtype = x.dtype

    # Small-problem fallback: the whole problem fits one tile, so the Pallas
    # launch + pad/slice passes are pure overhead; let XLA fuse it instead.
    if not force_pallas and B <= 128 and L <= 128 and D <= 1024:
        return (jnp.dot(x, weight.T,
                        precision=jax.lax.Precision.HIGHEST)
                + bias).astype(out_dtype)

    if params is None:  # cold path; normally hoisted to model-load time
        params = prepare_intent_classifier_params(weight, bias)
    assert params["L"] == L and params["D"] == D

    w_p, b_p = params["w"], params["b"]
    tL, tK, ksplit = params["tL"], params["tK"], params["ksplit"]
    L_pad, D_pad = params["L_pad"], params["D_pad"]
    budget = params["vmem_budget_bytes"]

    # Batch tile: largest multiple of 8 that fits the VMEM budget.
    tB = min(256, _round_up(B, 8))
    while tB > 8 and _working_set_bytes(tB, tL, tK, ksplit=ksplit) > budget:
        tB = max(8, _round_up(tB // 2, 8))

    # v7x: ensure at least one "parallel" axis has >= 2 blocks so both
    # TensorCores get work (no-op cost on single-TC chips).
    if pl.cdiv(B, tB) == 1 and (L_pad // tL) == 1 and _round_up(B, 8) >= 16:
        tB = max(8, _round_up(tB // 2, 8))

    B_pad = _round_up(B, tB)

    # Only materialize a padded copy of x when the shape requires it; x stays
    # f32 (the kernel casts to bf16), so no extra HBM cast pass.
    if (B_pad, D_pad) == x.shape:
        x_p = x
    else:
        x_p = jnp.zeros((B_pad, D_pad), x.dtype).at[:B, :D].set(x)

    cost = pl.CostEstimate(
        flops=2 * B_pad * D_pad * L_pad,
        transcendentals=0,
        bytes_accessed=int(x_p.size * x_p.dtype.itemsize
                           + w_p.size * 2 + b_p.size * 4
                           + B_pad * L_pad * jnp.dtype(out_dtype).itemsize),
    )
    vmem_limit = _vmem_limit_bytes()

    if not ksplit:
        grid = (B_pad // tB, L_pad // tL)
        out_p = pl.pallas_call(
            _linear_kernel_nosplit,
            out_shape=jax.ShapeDtypeStruct((B_pad, L_pad), out_dtype),
            grid=grid,
            in_specs=[
                pl.BlockSpec((tB, D_pad), lambda i, j: (i, 0)),   # x (f32)
                pl.BlockSpec((tL, D_pad), lambda i, j: (j, 0)),   # W (B-invariant)
                pl.BlockSpec((1, tL), lambda i, j: (0, j)),       # bias
            ],
            out_specs=pl.BlockSpec((tB, tL), lambda i, j: (i, j)),
            compiler_params=pltpu.CompilerParams(
                dimension_semantics=("parallel", "parallel"),
                vmem_limit_bytes=vmem_limit),
            cost_estimate=cost,
        )(x_p, w_p, b_p)
    else:
        grid = (B_pad // tB, L_pad // tL, D_pad // tK)
        out_p = pl.pallas_call(
            _linear_kernel_ksplit,
            out_shape=jax.ShapeDtypeStruct((B_pad, L_pad), out_dtype),
            grid=grid,
            in_specs=[
                pl.BlockSpec((tB, tK), lambda i, j, k: (i, k)),
                pl.BlockSpec((tL, tK), lambda i, j, k: (j, k)),
                pl.BlockSpec((1, tL), lambda i, j, k: (0, j)),
            ],
            out_specs=pl.BlockSpec((tB, tL), lambda i, j, k: (i, j)),
            scratch_shapes=[pltpu.VMEM((tB, tL), jnp.float32)],
            compiler_params=pltpu.CompilerParams(
                dimension_semantics=("parallel", "parallel", "arbitrary"),
                vmem_limit_bytes=vmem_limit),
            cost_estimate=cost,
        )(x_p, w_p, b_p)

    if (B_pad, L_pad) == (B, L):
        return out_p
    return out_p[:B, :L]


# ---------------------------------------------------------------------------
# Test
# ---------------------------------------------------------------------------

if __name__ == "__main__":
    key = jax.random.PRNGKey(0)

    def f32_ref(x, w, b):
        return jnp.dot(x, w.T, precision=jax.lax.Precision.HIGHEST) + b

    def bf16_ref(x, w, b):
        xb = x.astype(jnp.bfloat16).astype(jnp.float32)
        wb = w.astype(jnp.bfloat16).astype(jnp.float32)
        return jnp.dot(xb, wb.T, precision=jax.lax.Precision.HIGHEST) + b

    def make_inputs(key, B, D, L):
        k1, k2, k3 = jax.random.split(key, 3)
        x = jax.random.normal(k1, (B, D), jnp.float32)
        w = jax.random.normal(k2, (L, D), jnp.float32) * 0.1
        b = jax.random.normal(k3, (L,), jnp.float32) * 0.1
        return x, w, b

    # Case 1: shapes implied by the module (batch=8, input_dim=32, labels=8).
    k1, k2, k3, key = jax.random.split(key, 4)
    x, w, b = make_inputs(k1, 8, 32, 8)
    params = prepare_intent_classifier_params(w, b)   # hoisted weight prep
    out = jax.block_until_ready(
        intent_classifier(x, w, b, params=params, force_pallas=True))
    assert out.shape == (8, 8)
    assert jnp.allclose(out, bf16_ref(x, w, b), atol=1e-3, rtol=1e-3)
    assert jnp.allclose(out, f32_ref(x, w, b), atol=5e-2, rtol=5e-2)
    # Small-problem XLA fallback path (no forced Pallas).
    out_fb = jax.block_until_ready(intent_classifier(x, w, b, params=params))
    assert jnp.allclose(out_fb, f32_ref(x, w, b), atol=1e-4, rtol=1e-4)

    # Case 2: unaligned dims + batch split across 2 batch blocks.
    x, w, b = make_inputs(k2, 24, 200, 10)
    params = prepare_intent_classifier_params(w, b)
    out = jax.block_until_ready(
        intent_classifier(x, w, b, params=params, force_pallas=True))
    assert out.shape == (24, 10)
    assert jnp.allclose(out, bf16_ref(x, w, b), atol=1e-3, rtol=1e-3)
    assert jnp.allclose(out, f32_ref(x, w, b), atol=5e-2, rtol=5e-2)

    # Case 3: force the K-split accumulator fallback via a tiny VMEM budget.
    x, w, b = make_inputs(k3, 16, 1024, 8)
    params = prepare_intent_classifier_params(w, b, vmem_budget_bytes=400_000)
    assert params["ksplit"]
    out = jax.block_until_ready(
        intent_classifier(x, w, b, params=params, force_pallas=True))
    assert out.shape == (16, 8)
    assert jnp.allclose(out, bf16_ref(x, w, b), atol=1e-3, rtol=1e-3)
    assert jnp.allclose(out, f32_ref(x, w, b), atol=5e-2, rtol=5e-2)

    print("KERNEL_OK")
</pallas_src>

<mosaic_0001>
module attributes {stable_mosaic.version = 11 : i64} {
  func.func @_linear_kernel_nosplit(%arg0: i32, %arg1: i32, %arg2: memref<8x128xf32, #tpu.memory_space<vmem>>, %arg3: memref<128x128xbf16, #tpu.memory_space<vmem>>, %arg4: memref<1x128xf32, #tpu.memory_space<vmem>>, %arg5: memref<8x128xf32, #tpu.memory_space<vmem>>) attributes {dimension_semantics = [#tpu.dimension_semantics<parallel>, #tpu.dimension_semantics<parallel>], iteration_bounds = array<i64: 1, 1>, scalar_prefetch = 0 : i64, scratch_operands = 0 : i64, tpu.core_type = #tpu.core_type<tc>, window_params = [{transform_indices = @transform_0, window_bounds = array<i64: 8, 128>}, {transform_indices = @transform_1, window_bounds = array<i64: 128, 128>}, {transform_indices = @transform_2, window_bounds = array<i64: 1, 128>}, {transform_indices = @transform_3, window_bounds = array<i64: 8, 128>}]} {
    %c0 = arith.constant 0 : index
    %c0_0 = arith.constant 0 : index
    %0 = vector.load %arg2[%c0, %c0_0] : memref<8x128xf32, #tpu.memory_space<vmem>>, vector<8x128xf32>
    %1 = arith.truncf %0 : vector<8x128xf32> to vector<8x128xbf16>
    %c0_1 = arith.constant 0 : index
    %c0_2 = arith.constant 0 : index
    %2 = vector.load %arg3[%c0_1, %c0_2] : memref<128x128xbf16, #tpu.memory_space<vmem>>, vector<128x128xbf16>
    %cst = arith.constant dense<0.000000e+00> : vector<8x128xf32>
    %3 = tpu.matmul %1, %2, %cst {dimension_numbers = #tpu.dot_dimension_numbers<[1], [1], [0], [0], [0, 0, 1, 0], [], []>} : vector<8x128xbf16>, vector<128x128xbf16>, vector<8x128xf32> -> vector<8x128xf32>
    %c0_3 = arith.constant 0 : index
    %c0_4 = arith.constant 0 : index
    %4 = vector.load %arg4[%c0_3, %c0_4] : memref<1x128xf32, #tpu.memory_space<vmem>>, vector<1x128xf32>
    %5 = vector.broadcast %4 : vector<1x128xf32> to vector<8x128xf32>
    %6 = arith.addf %3, %5 : vector<8x128xf32>
    %c0_5 = arith.constant 0 : index
    %c0_6 = arith.constant 0 : index
    %7 = vector.load %arg5[%c0_5, %c0_6] : memref<8x128xf32, #tpu.memory_space<vmem>>, vector<8x128xf32>
    tpu.vector_store %arg5[%c0_5, %c0_6], %6 {strides = array<i32>} : memref<8x128xf32, #tpu.memory_space<vmem>>, vector<8x128xf32>,
    return
  }
  func.func @transform_0(%arg0: i32, %arg1: i32) -> (i32, i32) {
    %c0_i32 = arith.constant 0 : i32
    %c0_i32_0 = arith.constant 0 : i32
    return %arg0, %c0_i32 : i32, i32
  }
  func.func @transform_1(%arg0: i32, %arg1: i32) -> (i32, i32) {
    %c0_i32 = arith.constant 0 : i32
    %c0_i32_0 = arith.constant 0 : i32
    return %arg1, %c0_i32 : i32, i32
  }
  func.func @transform_2(%arg0: i32, %arg1: i32) -> (i32, i32) {
    %c0_i32 = arith.constant 0 : i32
    %c0_i32_0 = arith.constant 0 : i32
    return %c0_i32, %arg1 : i32, i32
  }
  func.func @transform_3(%arg0: i32, %arg1: i32) -> (i32, i32) {
    %c0_i32 = arith.constant 0 : i32
    return %arg0, %arg1 : i32, i32
  }
}

</mosaic_0001>

<bundles_post_ra>
// kernel: tpu_custom_call.1
= control target key start
LH: loop header
LB: loop body
LE: loop exit
PB: predicated region body
PF: predicated region fallthrough
CT: control target
= control target key end

     0   :  { %8 = vsyncpa [#allocation3], 0  ;;  %s308_s0 = inlined_call_operand.hbm [shape: f32[8,128], index: 0, kind: input, shape index: {}]   ;;  %s309_s1 = inlined_call_operand.hbm [shape: bf16[128,128], index: 1, kind: input, shape index: {}]   ;;  %s310_s2 = inlined_call_operand.vmem [shape: f32[1,128], index: 2, kind: input, shape index: {}]   ;;  %s311_s3 = inlined_call_operand.hbm [shape: f32[8,128], index: 3, kind: output, shape index: {}]  }
   0x1   :  { %9 = vsyncpa [#allocation6], 0 }
   0x2   :  { %10 = vsyncpa [#allocation4], 0  ;;  %s16_s14 = sshll.u32 %s308_s0, 4  ;;  %s271_s15 = smov [#allocation2]   ;;  %s17_s14 = int_to_ptr.hbm [resolvable:$true] %s16_s14 }
   0x3   :  { %s18_s16 = sshll.u32 %s271_s15, 4  ;;  %s26_s19 = sshll.u32 %s309_s1, 4  ;;  %s19_s16 = int_to_ptr.vmem [resolvable:$true] %s18_s16  ;;  %s27_s19 = int_to_ptr.hbm [resolvable:$true] %s26_s19 }
   0x4   :  { %21 = dma.hbm_to_vmem [thread:$0]  %s17_s14, 128, %s19_s16, [#allocation3]  }
   0x5   :  { %s272_s20 = smov [#allocation5]   ;;  %s273_s22 = smov 64  }
   0x6   :  { %s28_s21 = sshll.u32 %s272_s20, 4  ;;  %s274_s23 = smov 4   ;;  %s29_s21 = int_to_ptr.vmem [resolvable:$true] %s28_s21 }
   0x7   :  { %34 = dma.hbm_to_vmem [thread:$0]  %s27_s19, 1024, %s29_s21, [#allocation6], %s273_s22, %s273_s22, %s274_s23  }
   0x8   :  { %265 = dma.done.wait [#allocation3], 128  }
   0x9   :  { %266 = vsyncadd [#allocation3], 4294967168 }
   0xa   :  { %267 = dma.done.wait [#allocation6], 1024  }
   0xb   :  { %268 = vsyncadd [#allocation6], 4294966272  ;;  %v186_v0 = vld [vmem:[#allocation5 + $0x38] sm:$0xff]  ;;  %v185_v1 = vld [vmem:[#allocation5 + $0x30] sm:$0xff]  ;;  %s275_s24 = smov [#allocation7]   ;;  %s136_s28 = sshll.u32 %s311_s3, 4  ;;  %s137_s28 = int_to_ptr.hbm [resolvable:$true] %s136_s28 }
   0xc   :  { %115 = vmatpush.bf16.xpose.msra.mxu0 %v186_v0  ;;  %v184_v2 = vld [vmem:[#allocation5 + $0x28] sm:$0xff]  ;;  %v183_v3 = vld [vmem:[#allocation5 + $0x20] sm:$0xff]  ;;  %v182_v4 = vld [vmem:[#allocation5 + $0x18] sm:$0xff]  ;;  %s134_s25 = sshll.u32 %s275_s24, 4  ;;  %s135_s25 = int_to_ptr.vmem [resolvable:$true] %s134_s25 }
   0xd   :  { %v181_v5 = vld [vmem:[#allocation5 + $0x10] sm:$0xff]  ;;  %v180_v6 = vld [vmem:[#allocation5 + $0x8] sm:$0xff]  ;;  %v179_v7 = vld [vmem:[#allocation5] sm:$0xff] }
   0xe   :  { %v45_v8 = vld [vmem:[#allocation2] sm:$0xff] }
   0xf   :  { %v46_v9 = vpack.c.bf16 %v45_v8, %v45_v8  ;;  %v192_v10 = vld [vmem:[%s310_s2] ss:$0 sm:$0xff] }
  0x14   :  { %116 = vmatpush.bf16.xpose.msra.mxu0 %v185_v1 }
  0x1c   :  { %117 = vmatpush.bf16.xpose.msra.mxu0 %v184_v2 }
  0x24   :  { %118 = vmatpush.bf16.xpose.msra.mxu0 %v183_v3 }
  0x2c   :  { %119 = vmatpush.bf16.xpose.msra.mxu0 %v182_v4 }
  0x34   :  { %120 = vmatpush.bf16.xpose.msra.mxu0 %v181_v5 }
  0x3c   :  { %121 = vmatpush.bf16.xpose.msra.mxu0 %v180_v6 }
  0x44   :  { %122 = vmatpush.bf16.xpose.msra.mxu0 %v179_v7 }
  0x4b   :  { %123 = vmatmul.bf16.vlgmr.msra.gmra.mxu0 %v46_v9 }
  0xc8   :  { %v124_v11 = vpop.f32.mrf.mxu0 }
  0xc9   :  { %v125_v12 = vadd.f32 %v192_v10, %v124_v11 }
  0xcb   :  { %128 = vst [vmem:[#allocation7] sm:$0xff] %v125_v12 }
  0xcc   :  { %139 = dma.vmem_to_hbm [thread:$0]  %s135_s25, 128, %s137_s28, [#allocation4]  }
  0xd0   :  { %v126_v13 = vpop.f32.mrf.mxu0 }
  0xd1   :  { %269 = dma.done.wait [#allocation4], 128  }
  0xd2   :  { %270 = vsyncadd [#allocation4], 4294967168 }
  0xd3   :  { %144 = vsyncpa [#allocation3], 1 }
  0xd4   :  { %145 = vsyncpa [#allocation6], 1 }
  0xd5   :  { %146 = vsyncpa [#allocation4], 1 }

</bundles_post_ra>
